<compile_context>
chip_gen: v7x
topology: tpu7x:2x2x1
jax: 0.10.0
libtpu: 0.0.40
codegen_flags: <defaults>
</compile_context>

<pallas_src>
import functools

import jax
import jax.numpy as jnp
from jax.experimental import pallas as pl
from jax.experimental.pallas import tpu as pltpu

NEG_SLOPE = 0.01  # nn.LeakyReLU() default
SIZES = [(4, 64), (64, 64), (64, 32), (32, 2)]  # (in, out) per layer


def _leaky_relu(v):
    return jnp.where(v >= 0, v, NEG_SLOPE * v)


def _round_up(n, m):
    return ((n + m - 1) // m) * m


def qnet_kernel(x_ref,
                w1_ref, b1_ref,
                w2_ref, b2_ref,
                w3_ref, b3_ref,
                w4_ref, b4_ref,
                o_ref):
    # x tile: (4, TB) with batch on lanes.
    x = x_ref[...]
    w1 = w1_ref[...]                       # (64, 4)

    # Layer 1: K=4 -> 4 broadcast multiply-adds on the VPU (MXU would be ~3% utilized).
    acc = w1[:, 0:1] * x[0:1, :]           # (64, 1) * (1, TB) -> (64, TB)
    for k in range(1, 4):
        acc = acc + w1[:, k:k + 1] * x[k:k + 1, :]
    h1 = _leaky_relu(acc + b1_ref[...])    # bias (64, 1) broadcasts along lanes

    # Layers 2/3: 64x64 and 32x64 contractions on the MXU, N = batch tile (lane-dense).
    h2 = _leaky_relu(
        jnp.dot(w2_ref[...], h1, preferred_element_type=jnp.float32) + b2_ref[...])
    h3 = _leaky_relu(
        jnp.dot(w3_ref[...], h2, preferred_element_type=jnp.float32) + b3_ref[...])

    # Layer 4: (2, 32) @ (32, TB) -> (2, TB); output store is lane-dense.
    out = jnp.dot(w4_ref[...], h3, preferred_element_type=jnp.float32) + b4_ref[...]
    o_ref[...] = out.astype(o_ref.dtype)


@functools.partial(jax.jit, static_argnames=("block_b",))
def qnetwork_forward(x, params, block_b=2048):
    """x: (B, 4) float32.  params: w_i of shape (out, in), b_i of shape (out, 1)."""
    B = x.shape[0]
    # Lane tile: multiple of 128, capped at block_b; pad B up to a tile multiple.
    tb = min(_round_up(block_b, 128), _round_up(B, 128))
    b_pad = _round_up(B, tb)

    xt = jnp.pad(x.T.astype(jnp.float32), ((0, 0), (0, b_pad - B)))   # (4, B_pad)

    args = (
        xt,
        params["w1"], params["b1"],
        params["w2"], params["b2"],
        params["w3"], params["b3"],
        params["w4"], params["b4"],
    )

    const = lambda i: (0, 0)  # weights/biases resident across all batch tiles
    in_specs = [pl.BlockSpec((4, tb), lambda i: (0, i))]
    for a in args[1:]:
        in_specs.append(pl.BlockSpec(a.shape, const))
    out_spec = pl.BlockSpec((2, tb), lambda i: (0, i))

    flops_per_row = 2 * sum(fi * fo for fi, fo in SIZES)
    param_bytes = sum(int(a.size) * a.dtype.itemsize for a in args[1:])
    cost = pl.CostEstimate(
        flops=flops_per_row * b_pad,
        transcendentals=0,
        bytes_accessed=b_pad * 4 * (4 + 2) + param_bytes,
    )

    out_t = pl.pallas_call(
        qnet_kernel,
        out_shape=jax.ShapeDtypeStruct((2, b_pad), jnp.float32),
        grid=(b_pad // tb,),
        in_specs=in_specs,
        out_specs=out_spec,
        compiler_params=pltpu.CompilerParams(dimension_semantics=("parallel",)),
        cost_estimate=cost,
    )(*args)

    return out_t[:, :B].T  # (B, 2)


def init_params(key):
    """PyTorch-Linear-style uniform init; weights stored (out, in), biases (out, 1)."""
    params = {}
    for i, (fan_in, fan_out) in enumerate(SIZES, start=1):
        key, kw, kb = jax.random.split(key, 3)
        bound = 1.0 / (fan_in ** 0.5)
        params[f"w{i}"] = jax.random.uniform(
            kw, (fan_out, fan_in), jnp.float32, minval=-bound, maxval=bound)
        params[f"b{i}"] = jax.random.uniform(
            kb, (fan_out, 1), jnp.float32, minval=-bound, maxval=bound)
    return params


def reference_forward(x, params):
    h = x
    for i in (1, 2, 3):
        h = h @ params[f"w{i}"].T + params[f"b{i}"].T
        h = jnp.where(h >= 0, h, NEG_SLOPE * h)
    return h @ params["w4"].T + params["b4"].T


if __name__ == "__main__":
    key = jax.random.PRNGKey(0)
    key, kx1, kx2 = jax.random.split(key, 3)
    params = init_params(key)

    # Small batch (pads to one 128-lane tile).
    B1 = 8
    x1 = jax.random.normal(kx1, (B1, 4), jnp.float32)
    out1 = jax.block_until_ready(qnetwork_forward(x1, params))
    ref1 = reference_forward(x1, params)
    assert out1.shape == (B1, 2), out1.shape
    assert jnp.allclose(out1, ref1, atol=1e-5, rtol=1e-5), "mismatch vs reference (B=8)"

    # Non-multiple batch exercising the grid (>1 tile) and tail padding.
    B2 = 300
    x2 = jax.random.normal(kx2, (B2, 4), jnp.float32)
    out2 = jax.block_until_ready(qnetwork_forward(x2, params, block_b=128))
    ref2 = reference_forward(x2, params)
    assert out2.shape == (B2, 2), out2.shape
    assert jnp.allclose(out2, ref2, atol=1e-5, rtol=1e-5), "mismatch vs reference (B=300)"

    print("KERNEL_OK")
</pallas_src>

<mosaic_0001>
module attributes {stable_mosaic.version = 11 : i64} {
  func.func @qnet_kernel(%arg0: i32, %arg1: memref<4x128xf32, #tpu.memory_space<vmem>>, %arg2: memref<64x4xf32, #tpu.memory_space<vmem>>, %arg3: memref<64x1xf32, #tpu.memory_space<vmem>>, %arg4: memref<64x64xf32, #tpu.memory_space<vmem>>, %arg5: memref<64x1xf32, #tpu.memory_space<vmem>>, %arg6: memref<32x64xf32, #tpu.memory_space<vmem>>, %arg7: memref<32x1xf32, #tpu.memory_space<vmem>>, %arg8: memref<2x32xf32, #tpu.memory_space<vmem>>, %arg9: memref<2x1xf32, #tpu.memory_space<vmem>>, %arg10: memref<2x128xf32, #tpu.memory_space<vmem>>) attributes {dimension_semantics = [#tpu.dimension_semantics<parallel>], iteration_bounds = array<i64: 1>, scalar_prefetch = 0 : i64, scratch_operands = 0 : i64, tpu.core_type = #tpu.core_type<tc>, window_params = [{transform_indices = @transform_0, window_bounds = array<i64: 4, 128>}, {pipeline_mode = #tpu.pipeline_mode<synchronous>, transform_indices = @transform_1, window_bounds = array<i64: 64, 4>}, {pipeline_mode = #tpu.pipeline_mode<synchronous>, transform_indices = @transform_2, window_bounds = array<i64: 64, 1>}, {pipeline_mode = #tpu.pipeline_mode<synchronous>, transform_indices = @transform_3, window_bounds = array<i64: 64, 64>}, {pipeline_mode = #tpu.pipeline_mode<synchronous>, transform_indices = @transform_4, window_bounds = array<i64: 64, 1>}, {pipeline_mode = #tpu.pipeline_mode<synchronous>, transform_indices = @transform_5, window_bounds = array<i64: 32, 64>}, {pipeline_mode = #tpu.pipeline_mode<synchronous>, transform_indices = @transform_6, window_bounds = array<i64: 32, 1>}, {pipeline_mode = #tpu.pipeline_mode<synchronous>, transform_indices = @transform_7, window_bounds = array<i64: 2, 32>}, {pipeline_mode = #tpu.pipeline_mode<synchronous>, transform_indices = @transform_8, window_bounds = array<i64: 2, 1>}, {transform_indices = @transform_9, window_bounds = array<i64: 2, 128>}]} {
    %c0 = arith.constant 0 : index
    %c0_0 = arith.constant 0 : index
    %0 = vector.load %arg1[%c0, %c0_0] : memref<4x128xf32, #tpu.memory_space<vmem>>, vector<4x128xf32>
    %c0_1 = arith.constant 0 : index
    %c0_2 = arith.constant 0 : index
    %1 = vector.load %arg2[%c0_1, %c0_2] : memref<64x4xf32, #tpu.memory_space<vmem>>, vector<64x4xf32>
    %2 = vector.extract_strided_slice %1 {offsets = [0, 0], sizes = [64, 1], strides = [1, 1]} : vector<64x4xf32> to vector<64x1xf32>
    %3 = vector.extract_strided_slice %0 {offsets = [0, 0], sizes = [1, 128], strides = [1, 1]} : vector<4x128xf32> to vector<1x128xf32>
    %4 = vector.broadcast %2 : vector<64x1xf32> to vector<64x128xf32>
    %5 = vector.broadcast %3 : vector<1x128xf32> to vector<64x128xf32>
    %6 = arith.mulf %4, %5 : vector<64x128xf32>
    %7 = vector.extract_strided_slice %1 {offsets = [0, 1], sizes = [64, 1], strides = [1, 1]} : vector<64x4xf32> to vector<64x1xf32>
    %8 = vector.extract_strided_slice %0 {offsets = [1, 0], sizes = [1, 128], strides = [1, 1]} : vector<4x128xf32> to vector<1x128xf32>
    %9 = vector.broadcast %7 : vector<64x1xf32> to vector<64x128xf32>
    %10 = vector.broadcast %8 : vector<1x128xf32> to vector<64x128xf32>
    %11 = arith.mulf %9, %10 : vector<64x128xf32>
    %12 = arith.addf %6, %11 : vector<64x128xf32>
    %13 = vector.extract_strided_slice %1 {offsets = [0, 2], sizes = [64, 1], strides = [1, 1]} : vector<64x4xf32> to vector<64x1xf32>
    %14 = vector.extract_strided_slice %0 {offsets = [2, 0], sizes = [1, 128], strides = [1, 1]} : vector<4x128xf32> to vector<1x128xf32>
    %15 = vector.broadcast %13 : vector<64x1xf32> to vector<64x128xf32>
    %16 = vector.broadcast %14 : vector<1x128xf32> to vector<64x128xf32>
    %17 = arith.mulf %15, %16 : vector<64x128xf32>
    %18 = arith.addf %12, %17 : vector<64x128xf32>
    %19 = vector.extract_strided_slice %1 {offsets = [0, 3], sizes = [64, 1], strides = [1, 1]} : vector<64x4xf32> to vector<64x1xf32>
    %20 = vector.extract_strided_slice %0 {offsets = [3, 0], sizes = [1, 128], strides = [1, 1]} : vector<4x128xf32> to vector<1x128xf32>
    %21 = vector.broadcast %19 : vector<64x1xf32> to vector<64x128xf32>
    %22 = vector.broadcast %20 : vector<1x128xf32> to vector<64x128xf32>
    %23 = arith.mulf %21, %22 : vector<64x128xf32>
    %24 = arith.addf %18, %23 : vector<64x128xf32>
    %c0_3 = arith.constant 0 : index
    %c0_4 = arith.constant 0 : index
    %25 = vector.load %arg3[%c0_3, %c0_4] : memref<64x1xf32, #tpu.memory_space<vmem>>, vector<64x1xf32>
    %26 = vector.broadcast %25 : vector<64x1xf32> to vector<64x128xf32>
    %27 = arith.addf %24, %26 : vector<64x128xf32>
    %cst = arith.constant 0.000000e+00 : f32
    %28 = vector.broadcast %cst : f32 to vector<64x128xf32>
    %29 = arith.cmpf oge, %27, %28 : vector<64x128xf32>
    %cst_5 = arith.constant 0.00999999977 : f32
    %30 = vector.broadcast %cst_5 : f32 to vector<64x128xf32>
    %31 = arith.mulf %30, %27 : vector<64x128xf32>
    %32 = arith.select %29, %27, %31 : vector<64x128xi1>, vector<64x128xf32>
    %c0_6 = arith.constant 0 : index
    %c0_7 = arith.constant 0 : index
    %33 = vector.load %arg4[%c0_6, %c0_7] : memref<64x64xf32, #tpu.memory_space<vmem>>, vector<64x64xf32>
    %cst_8 = arith.constant dense<0.000000e+00> : vector<64x128xf32>
    %34 = tpu.matmul %33, %32, %cst_8 {dimension_numbers = #tpu.dot_dimension_numbers<[1], [0], [0], [1], [0, 0, 1, 1], [], []>} : vector<64x64xf32>, vector<64x128xf32>, vector<64x128xf32> -> vector<64x128xf32>
    %c0_9 = arith.constant 0 : index
    %c0_10 = arith.constant 0 : index
    %35 = vector.load %arg5[%c0_9, %c0_10] : memref<64x1xf32, #tpu.memory_space<vmem>>, vector<64x1xf32>
    %36 = vector.broadcast %35 : vector<64x1xf32> to vector<64x128xf32>
    %37 = arith.addf %34, %36 : vector<64x128xf32>
    %cst_11 = arith.constant 0.000000e+00 : f32
    %38 = vector.broadcast %cst_11 : f32 to vector<64x128xf32>
    %39 = arith.cmpf oge, %37, %38 : vector<64x128xf32>
    %cst_12 = arith.constant 0.00999999977 : f32
    %40 = vector.broadcast %cst_12 : f32 to vector<64x128xf32>
    %41 = arith.mulf %40, %37 : vector<64x128xf32>
    %42 = arith.select %39, %37, %41 : vector<64x128xi1>, vector<64x128xf32>
    %c0_13 = arith.constant 0 : index
    %c0_14 = arith.constant 0 : index
    %43 = vector.load %arg6[%c0_13, %c0_14] : memref<32x64xf32, #tpu.memory_space<vmem>>, vector<32x64xf32>
    %cst_15 = arith.constant dense<0.000000e+00> : vector<32x128xf32>
    %44 = tpu.matmul %43, %42, %cst_15 {dimension_numbers = #tpu.dot_dimension_numbers<[1], [0], [0], [1], [0, 0, 1, 1], [], []>} : vector<32x64xf32>, vector<64x128xf32>, vector<32x128xf32> -> vector<32x128xf32>
    %c0_16 = arith.constant 0 : index
    %c0_17 = arith.constant 0 : index
    %45 = vector.load %arg7[%c0_16, %c0_17] : memref<32x1xf32, #tpu.memory_space<vmem>>, vector<32x1xf32>
    %46 = vector.broadcast %45 : vector<32x1xf32> to vector<32x128xf32>
    %47 = arith.addf %44, %46 : vector<32x128xf32>
    %cst_18 = arith.constant 0.000000e+00 : f32
    %48 = vector.broadcast %cst_18 : f32 to vector<32x128xf32>
    %49 = arith.cmpf oge, %47, %48 : vector<32x128xf32>
    %cst_19 = arith.constant 0.00999999977 : f32
    %50 = vector.broadcast %cst_19 : f32 to vector<32x128xf32>
    %51 = arith.mulf %50, %47 : vector<32x128xf32>
    %52 = arith.select %49, %47, %51 : vector<32x128xi1>, vector<32x128xf32>
    %c0_20 = arith.constant 0 : index
    %c0_21 = arith.constant 0 : index
    %53 = vector.load %arg8[%c0_20, %c0_21] : memref<2x32xf32, #tpu.memory_space<vmem>>, vector<2x32xf32>
    %cst_22 = arith.constant dense<0.000000e+00> : vector<2x128xf32>
    %54 = tpu.matmul %53, %52, %cst_22 {dimension_numbers = #tpu.dot_dimension_numbers<[1], [0], [0], [1], [0, 0, 1, 1], [], []>} : vector<2x32xf32>, vector<32x128xf32>, vector<2x128xf32> -> vector<2x128xf32>
    %c0_23 = arith.constant 0 : index
    %c0_24 = arith.constant 0 : index
    %55 = vector.load %arg9[%c0_23, %c0_24] : memref<2x1xf32, #tpu.memory_space<vmem>>, vector<2x1xf32>
    %56 = vector.broadcast %55 : vector<2x1xf32> to vector<2x128xf32>
    %57 = arith.addf %54, %56 : vector<2x128xf32>
    %c0_25 = arith.constant 0 : index
    %c0_26 = arith.constant 0 : index
    %58 = vector.load %arg10[%c0_25, %c0_26] : memref<2x128xf32, #tpu.memory_space<vmem>>, vector<2x128xf32>
    tpu.vector_store %arg10[%c0_25, %c0_26], %57 {strides = array<i32>} : memref<2x128xf32, #tpu.memory_space<vmem>>, vector<2x128xf32>,
    return
  }
  func.func @transform_0(%arg0: i32) -> (i32, i32) {
    %c0_i32 = arith.constant 0 : i32
    %c0_i32_0 = arith.constant 0 : i32
    return %c0_i32, %arg0 : i32, i32
  }
  func.func @transform_1(%arg0: i32) -> (i32, i32) {
    %c0_i32 = arith.constant 0 : i32
    %c0_i32_0 = arith.constant 0 : i32
    %c0_i32_1 = arith.constant 0 : i32
    return %c0_i32, %c0_i32_0 : i32, i32
  }
  func.func @transform_2(%arg0: i32) -> (i32, i32) {
    %c0_i32 = arith.constant 0 : i32
    %c0_i32_0 = arith.constant 0 : i32
    %c0_i32_1 = arith.constant 0 : i32
    return %c0_i32, %c0_i32_0 : i32, i32
  }
  func.func @transform_3(%arg0: i32) -> (i32, i32) {
    %c0_i32 = arith.constant 0 : i32
    %c0_i32_0 = arith.constant 0 : i32
    %c0_i32_1 = arith.constant 0 : i32
    return %c0_i32, %c0_i32_0 : i32, i32
  }
  func.func @transform_4(%arg0: i32) -> (i32, i32) {
    %c0_i32 = arith.constant 0 : i32
    %c0_i32_0 = arith.constant 0 : i32
    %c0_i32_1 = arith.constant 0 : i32
    return %c0_i32, %c0_i32_0 : i32, i32
  }
  func.func @transform_5(%arg0: i32) -> (i32, i32) {
    %c0_i32 = arith.constant 0 : i32
    %c0_i32_0 = arith.constant 0 : i32
    %c0_i32_1 = arith.constant 0 : i32
    return %c0_i32, %c0_i32_0 : i32, i32
  }
  func.func @transform_6(%arg0: i32) -> (i32, i32) {
    %c0_i32 = arith.constant 0 : i32
    %c0_i32_0 = arith.constant 0 : i32
    %c0_i32_1 = arith.constant 0 : i32
    return %c0_i32, %c0_i32_0 : i32, i32
  }
  func.func @transform_7(%arg0: i32) -> (i32, i32) {
    %c0_i32 = arith.constant 0 : i32
    %c0_i32_0 = arith.constant 0 : i32
    %c0_i32_1 = arith.constant 0 : i32
    return %c0_i32, %c0_i32_0 : i32, i32
  }
  func.func @transform_8(%arg0: i32) -> (i32, i32) {
    %c0_i32 = arith.constant 0 : i32
    %c0_i32_0 = arith.constant 0 : i32
    %c0_i32_1 = arith.constant 0 : i32
    return %c0_i32, %c0_i32_0 : i32, i32
  }
  func.func @transform_9(%arg0: i32) -> (i32, i32) {
    %c0_i32 = arith.constant 0 : i32
    %c0_i32_0 = arith.constant 0 : i32
    return %c0_i32, %arg0 : i32, i32
  }
}

</mosaic_0001>

<bundles_post_ra>
// kernel: qnetwork_forward.1
= control target key start
LH: loop header
LB: loop body
LE: loop exit
PB: predicated region body
PF: predicated region fallthrough
CT: control target
= control target key end

     0   :  { %v936_v0 = vmov 1   ;;  %v937_v4 = vmov 2   ;;  %v938_v7 = vmov 0   ;;  %v939_v8 = vmov 3   ;;  %s1220_s1 = inlined_call_operand.vmem [shape: f32[64,4], index: 1, kind: input, shape index: {}]   ;;  %s1221_s2 = inlined_call_operand.vmem [shape: f32[64,1], index: 2, kind: input, shape index: {}]   ;;  %s1222_s4 = inlined_call_operand.vmem [shape: f32[64,1], index: 4, kind: input, shape index: {}]   ;;  %s1223_s6 = inlined_call_operand.vmem [shape: f32[32,1], index: 6, kind: input, shape index: {}]   ;;  %s1224_s8 = inlined_call_operand.vmem [shape: f32[2,1], index: 8, kind: input, shape index: {}]   ;;  %s1225_s3 = inlined_call_operand.vmem [shape: f32[64,64], index: 3, kind: input, shape index: {}]   ;;  %s1226_s0 = inlined_call_operand.vmem [shape: f32[4,128], index: 0, kind: input, shape index: {}]   ;;  %s1227_s5 = inlined_call_operand.vmem [shape: f32[32,64], index: 5, kind: input, shape index: {}]   ;;  %s1228_s7 = inlined_call_operand.vmem [shape: f32[2,32], index: 7, kind: input, shape index: {}]   ;;  %s1229_s9 = inlined_call_operand.vmem [shape: f32[2,128], index: 9, kind: output, shape index: {}]  }
   0x1   :  { %921 = vset.pattern.permute.xlu0 %v936_v0  ;;  %914 = vset.pattern.permute.xlu1 %v936_v0  ;;  %v37_v1 = vld [vmem:[%s1220_s1 + $0x20] sm:$0xff]  ;;  %v34_v3 = vld [vmem:[%s1220_s1 + $0x8] sm:$0xff]  ;;  %v36_v5 = vld [vmem:[%s1220_s1 + $0x18] sm:$0xff]  ;;  %vm385_vm0 = vcmask 523264   ;;  %v81_v45 = vlaneseq }
   0x2   :  { %v33_v2 = vld [vmem:[%s1220_s1] sm:$0xff]  ;;  %110 = vperm.xlu0 %921, %v37_v1   ;;  %v35_v6 = vld [vmem:[%s1220_s1 + $0x10] sm:$0xff]  ;;  %v38_v10 = vld [vmem:[%s1220_s1 + $0x28] sm:$0xff] }
   0x3   :  { %94 = vperm.xlu1 %914, %v33_v2   ;;  %v39_v9 = vld [vmem:[%s1220_s1 + $0x30] sm:$0xff]  ;;  %v40_v11 = vld [vmem:[%s1220_s1 + $0x38] sm:$0xff]  ;;  %v254_v13 = vld [vmem:[%s1221_s2 + $0x28] sm:$0xff]  ;;  %v82_v47 = vshrl.u32 %v81_v45, 7 }
   0x4   :  { %v252_v12 = vld [vmem:[%s1221_s2 + $0x18] sm:$0xff]  ;;  %v249_v14 = vld [vmem:[%s1221_s2] sm:$0xff]  ;;  %v250_v16 = vld [vmem:[%s1221_s2 + $0x8] sm:$0xff] }
   0x5   :  { %v337_v15 = vld [vmem:[%s1222_s4] sm:$0xff]  ;;  %v339_v17 = vld [vmem:[%s1222_s4 + $0x10] sm:$0xff]  ;;  %v256_v26 = vld [vmem:[%s1221_s2 + $0x38] sm:$0xff]  ;;  %v127_v50 = vsub.s32 1, %v82_v47  ;;  %v179_v52 = vsub.s32 2, %v82_v47  ;;  %v83_v53 = vsub.s32 0, %v82_v47 }
   0x6   :  { %922 = vset.pattern.permute.xlu0 %v937_v4  ;;  %v341_v18 = vld [vmem:[%s1222_s4 + $0x20] sm:$0xff]  ;;  %v343_v19 = vld [vmem:[%s1222_s4 + $0x30] sm:$0xff]  ;;  %v338_v27 = vld [vmem:[%s1222_s4 + $0x8] sm:$0xff]  ;;  %v231_v57 = vsub.s32 3, %v82_v47 }
   0x7   :  { %98 = vperm.xlu1 %914, %v34_v3   ;;  %146 = vperm.xlu0 %922, %v33_v2   ;;  %v543_v20 = vld [vmem:[%s1223_s6] sm:$0xff]  ;;  %v545_v21 = vld [vmem:[%s1223_s6 + $0x10] sm:$0xff]  ;;  %v340_v28 = vld [vmem:[%s1222_s4 + $0x18] sm:$0xff] }
   0x8   :  { %v677_v22 = vld [vmem:[%s1224_s8] sm:$0x3]  ;;  %v251_v23 = vld [vmem:[%s1221_s2 + $0x10] sm:$0xff]  ;;  %v342_v29 = vld [vmem:[%s1222_s4 + $0x28] sm:$0xff] }
   0x9   :  { %v253_v24 = vld [vmem:[%s1221_s2 + $0x20] sm:$0xff]  ;;  %v255_v25 = vld [vmem:[%s1221_s2 + $0x30] sm:$0xff]  ;;  %v344_v33 = vld [vmem:[%s1222_s4 + $0x38] sm:$0xff] }
   0xa   :  { %v329_v30 = vld [vmem:[%s1225_s3] sm:$0xff]  ;;  %v544_v36 = vld [vmem:[%s1223_s6 + $0x8] sm:$0xff]  ;;  %v546_v39 = vld [vmem:[%s1223_s6 + $0x18] sm:$0xff] }
   0xb   :  { %915 = vset.pattern.permute.xlu1 %v937_v4  ;;  %158 = vperm.xlu0 %922, %v36_v5   ;;  %v32_v51 = vld [vmem:[%s1226_s0] sm:$0xf] }
   0xc   :  { %150 = vperm.xlu1 %915, %v34_v3   ;;  %824 = vmatprep.mubr.msk.f32.mxu0 %vm385_vm0, %v329_v30  ;;  %v1119_v56 = vrot.slane %v32_v51, %v127_v50  ;;  %v1122_v59 = vrot.slane %v32_v51, %v179_v52  ;;  %v1124_v60 = vrot.slane %v32_v51, %v83_v53 }
   0xd   :  { %v1127_v63 = vrot.slane %v32_v51, %v231_v57 }
   0xf   :  { %162 = vperm.xlu0 %922, %v37_v1  }
  0x10   :  { %916 = vset.pattern.permute.xlu1 %v938_v7 }
  0x11   :  { %53 = vperm.xlu1 %916, %v35_v6  }
  0x13   :  { %926 = vset.pattern.permute.xlu0 %v939_v8 }
  0x14   :  { %198 = vperm.xlu0 %926, %v33_v2  }
  0x15   :  { %917 = vset.pattern.permute.xlu1 %v936_v0 }
  0x16   :  { %102 = vperm.xlu1 %917, %v35_v6  }
  0x18   :  { %210 = vperm.xlu0 %926, %v36_v5  }
  0x1a   :  { %106 = vperm.xlu1 %917, %v36_v5  }
  0x1c   :  { %214 = vperm.xlu0 %926, %v37_v1  }
  0x1e   :  { %918 = vset.pattern.permute.xlu1 %v939_v8 }
  0x1f   :  { %202 = vperm.xlu1 %918, %v34_v3  }
  0x20   :  { %222 = vperm.xlu0 %926, %v39_v9  }
  0x23   :  { %919 = vset.pattern.permute.xlu1 %v937_v4 }
  0x24   :  { %154 = vperm.xlu1 %919, %v35_v6   ;;  %933 = vset.pattern.permute.xlu0 %v938_v7 }
  0x25   :  { %43 = vperm.xlu0 %933, %v33_v2  }
  0x28   :  { %920 = vset.pattern.permute.xlu1 %v938_v7 }
  0x29   :  { %63 = vperm.xlu1 %920, %v37_v1   ;;  %48 = vperm.xlu0 %933, %v34_v3  }
  0x2d   :  { %68 = vperm.xlu1 %920, %v38_v10   ;;  %58 = vperm.xlu0 %933, %v36_v5  }
  0x31   :  { %923 = vset.pattern.permute.xlu1 %v936_v0  ;;  %78 = vperm.xlu0 %933, %v40_v11  }
  0x32   :  { %114 = vperm.xlu1 %923, %v38_v10  }
  0x35   :  { %274 = vperm.xlu0 %933, %v252_v12  }
  0x36   :  { %924 = vset.pattern.permute.xlu1 %v939_v8 }
  0x37   :  { %206 = vperm.xlu1 %924, %v35_v6  }
  0x39   :  { %284 = vperm.xlu0 %933, %v254_v13  }
  0x3b   :  { %925 = vset.pattern.permute.xlu1 %v938_v7 }
  0x3c   :  { %259 = vperm.xlu1 %925, %v249_v14  }
  0x3d   :  { %347 = vperm.xlu0 %933, %v337_v15  }
  0x40   :  { %264 = vperm.xlu1 %925, %v250_v16  }
  0x41   :  { %357 = vperm.xlu0 %933, %v339_v17  }
  0x44   :  { %927 = vset.pattern.permute.xlu1 %v937_v4 }
  0x45   :  { %166 = vperm.xlu1 %927, %v38_v10   ;;  %367 = vperm.xlu0 %933, %v341_v18  }
  0x49   :  { %928 = vset.pattern.permute.xlu1 %v938_v7  ;;  %377 = vperm.xlu0 %933, %v343_v19  }
  0x4a   :  { %73 = vperm.xlu1 %928, %v39_v9  }
  0x4d   :  { %549 = vperm.xlu0 %933, %v543_v20  }
  0x4e   :  { %929 = vset.pattern.permute.xlu1 %v936_v0 }
  0x4f   :  { %118 = vperm.xlu1 %929, %v39_v9  }
  0x51   :  { %559 = vperm.xlu0 %933, %v545_v21  }
  0x53   :  { %122 = vperm.xlu1 %929, %v40_v11  }
  0x55   :  { %680 = vperm.xlu0 %933, %v677_v22  }
  0x57   :  { %930 = vset.pattern.permute.xlu1 %v939_v8 }
  0x58   :  { %218 = vperm.xlu1 %930, %v38_v10  }
  0x5c   :  { %931 = vset.pattern.permute.xlu1 %v938_v7 }
  0x5d   :  { %269 = vperm.xlu1 %931, %v251_v23  }
  0x61   :  { %932 = vset.pattern.permute.xlu1 %v937_v4 }
  0x62   :  { %170 = vperm.xlu1 %932, %v39_v9  }
  0x66   :  { %174 = vperm.xlu1 %932, %v40_v11  }
  0x6a   :  { %934 = vset.pattern.permute.xlu1 %v939_v8 }
  0x6b   :  { %226 = vperm.xlu1 %934, %v40_v11  }
  0x6f   :  { %935 = vset.pattern.permute.xlu1 %v938_v7 }
  0x70   :  { %279 = vperm.xlu1 %935, %v253_v24  }
  0x74   :  { %289 = vperm.xlu1 %935, %v255_v25  }
  0x78   :  { %294 = vperm.xlu1 %935, %v256_v26  }
  0x7c   :  { %352 = vperm.xlu1 %935, %v338_v27  }
  0x80   :  { %362 = vperm.xlu1 %935, %v340_v28  }
  0x81   :  { %v111_v32 = vpop.permute.xlu0 %110 }
  0x82   :  { %v95_v31 = vpop.permute.xlu1 %94  ;;  %v133_v58 = vmul.f32 %v1119_v56, %v111_v32 }
  0x83   :  { %v129_v9 = vmul.f32 %v1119_v56, %v95_v31 }
  0x84   :  { %372 = vperm.xlu1 %935, %v342_v29  }
  0x86   :  { %v99_v34 = vpop.permute.xlu1 %98  ;;  %v147_v35 = vpop.permute.xlu0 %146 }
  0x87   :  { %v181_v11 = vmul.f32 %v1122_v59, %v147_v35  ;;  %v130_v14 = vmul.f32 %v1119_v56, %v99_v34 }
  0x88   :  { %382 = vperm.xlu1 %935, %v344_v33  }
  0x8a   :  { %v1103_v38 = vpop.permute.xlu0 %158 }
  0x8b   :  { %v151_v37 = vpop.permute.xlu1 %150 }
  0x8c   :  { %554 = vperm.xlu1 %935, %v544_v36   ;;  %v182_v19 = vmul.f32 %v1122_v59, %v151_v37 }
  0x8e   :  { %v163_v40 = vpop.permute.xlu0 %162 }
  0x8f   :  { %v185_v62 = vmul.f32 %v1122_v59, %v163_v40 }
  0x90   :  { %564 = vperm.xlu1 %935, %v546_v39   ;;  %v1108_v41 = vpop.permute.xlu1 %53  ;;  %v184_v39 = vmul.f32 %v1122_v59, %v1103_v38 }
  0x91   :  { %v87_v51 = vmul.f32 %v1124_v60, %v1108_v41 }
  0x93   :  { %v199_v42 = vpop.permute.xlu0 %198 }
  0x94   :  { %v233_v15 = vmul.f32 %v1127_v63, %v199_v42 }
  0x95   :  { %v1110_v43 = vpop.permute.xlu1 %102 }
  0x96   :  { %v131_v50 = vmul.f32 %v1119_v56, %v1110_v43 }
  0x97   :  { %v1112_v44 = vpop.permute.xlu0 %210 }
  0x98   :  { %v236_v47 = vmul.f32 %v1127_v63, %v1112_v44  ;;  %v139_v57 = vadd.f32 %v131_v50, %v87_v51  ;;  %v334_v50 = vld [vmem:[%s1225_s3 + $0x28] sm:$0xff]  ;;  %v335_v51 = vld [vmem:[%s1225_s3 + $0x30] sm:$0xff] }
  0x99   :  { %v107_v46 = vpop.permute.xlu1 %106 }
  0x9a   :  { %v132_v37 = vmul.f32 %v1119_v56, %v107_v46 }
  0x9b   :  { %v215_v48 = vpop.permute.xlu0 %214 }
  0x9c   :  { %v237_v2 = vmul.f32 %v1127_v63, %v215_v48 }
  0x9e   :  { %v203_v49 = vpop.permute.xlu1 %202 }
  0x9f   :  { %v1117_v54 = vpop.permute.xlu0 %222  ;;  %v234_v23 = vmul.f32 %v1127_v63, %v203_v49 }
  0xa3   :  { %v155_v55 = vpop.permute.xlu1 %154 }
  0xa4   :  { %v44_v0 = vpop.permute.xlu0 %43  ;;  %v183_v52 = vmul.f32 %v1122_v59, %v155_v55 }
  0xa5   :  { %v85_v6 = vmul.f32 %v1124_v60, %v44_v0 }
  0xa7   :  { %v137_v12 = vadd.f32 %v129_v9, %v85_v6 }
  0xa8   :  { %v64_v61 = vpop.permute.xlu1 %63  ;;  %v49_v7 = vpop.permute.xlu0 %48 }
  0xa9   :  { %v89_v1 = vmul.f32 %v1124_v60, %v64_v61  ;;  %v86_v13 = vmul.f32 %v1124_v60, %v49_v7  ;;  %v189_v18 = vadd.f32 %v181_v11, %v137_v12  ;;  %v191_v61 = vadd.f32 %v183_v52, %v139_v57  ;;  %v336_v52 = vld [vmem:[%s1225_s3 + $0x38] sm:$0xff] }
  0xab   :  { %v141_v3 = vadd.f32 %v133_v58, %v89_v1  ;;  %v138_v16 = vadd.f32 %v130_v14, %v86_v13  ;;  %v241_v20 = vadd.f32 %v233_v15, %v189_v18 }
  0xac   :  { %v1131_v4 = vpop.permute.xlu1 %68  ;;  %v59_v34 = vpop.permute.xlu0 %58 }
  0xad   :  { %v193_v5 = vadd.f32 %v185_v62, %v141_v3  ;;  %v190_v21 = vadd.f32 %v182_v19, %v138_v16  ;;  %v88_v35 = vmul.f32 %v1124_v60, %v59_v34  ;;  %v90_v6 = vmul.f32 %v1124_v60, %v1131_v4 }
  0xaf   :  { %v1134_v8 = vadd.f32 %v237_v2, %v193_v5  ;;  %v242_v25 = vadd.f32 %v234_v23, %v190_v21  ;;  %v140_v40 = vadd.f32 %v132_v37, %v88_v35 }
  0xb0   :  { %v79_v45 = vpop.permute.xlu0 %78 }
  0xb1   :  { %v115_v10 = vpop.permute.xlu1 %114  ;;  %v192_v48 = vadd.f32 %v184_v39, %v140_v40  ;;  %v92_v21 = vmul.f32 %v1124_v60, %v79_v45  ;;  %v330_v45 = vld [vmem:[%s1225_s3 + $0x8] sm:$0xff] }
  0xb2   :  { %v134_v3 = vmul.f32 %v1119_v56, %v115_v10 }
  0xb3   :  { %v244_v46 = vadd.f32 %v236_v47, %v192_v48  ;;  %v331_v47 = vld [vmem:[%s1225_s3 + $0x10] sm:$0xff]  ;;  %v332_v48 = vld [vmem:[%s1225_s3 + $0x18] sm:$0xff] }
  0xb4   :  { %v275_v53 = vpop.permute.xlu0 %274  ;;  %v142_v11 = vadd.f32 %v134_v3, %v90_v6 }
  0xb5   :  { %v300_v62 = vadd.f32 %v275_v53, %v244_v46  ;;  %v539_v46 = vld [vmem:[%s1227_s5] sm:$0xff] }
  0xb6   :  { %v207_v17 = vpop.permute.xlu1 %206  ;;  %852 = vmatprep.mubr.msk.f32.mxu1 %vm385_vm0, %v539_v46 }
  0xb7   :  { %v235_v38 = vmul.f32 %v1127_v63, %v207_v17  ;;  %v316_v1 = vmul.f32 0.01, %v300_v62  ;;  %vm308_vm3 = vcmp.ge.f32.partialorder %v300_v62, 0.0 }
  0xb8   :  { %v285_v19 = vpop.permute.xlu0 %284 }
  0xb9   :  { %v243_v0 = vadd.f32 %v235_v38, %v191_v61  ;;  %v324_v55 = vsel %vm308_vm3, %v300_v62, %v316_v1 }
  0xbb   :  { %v260_v22 = vpop.permute.xlu1 %259 }
  0xbc   :  { %v297_v24 = vadd.f32 %v260_v22, %v241_v20  ;;  %v348_v57 = vpop.permute.xlu0 %347 }
  0xbe   :  { %v313_v27 = vmul.f32 0.01, %v297_v24  ;;  %vm305_vm1 = vcmp.ge.f32.partialorder %v297_v24, 0.0 }
  0xbf   :  { %v265_v26 = vpop.permute.xlu1 %264 }
  0xc0   :  { %v298_v28 = vadd.f32 %v265_v26, %v242_v25  ;;  %v321_v31 = vsel %vm305_vm1, %v297_v24, %v313_v27  ;;  %v239_v25 = vmul.f32 %v1127_v63, %v1117_v54  ;;  %v358_v61 = vpop.permute.xlu0 %357 }
  0xc2   :  { %v314_v29 = vmul.f32 0.01, %v298_v28  ;;  %vm306_vm2 = vcmp.ge.f32.partialorder %v298_v28, 0.0 }
  0xc4   :  { %v167_v30 = vpop.permute.xlu1 %166  ;;  %v322_v32 = vsel %vm306_vm2, %v298_v28, %v314_v29  ;;  %vm941_vm2 = vmmov 0  }
  0xc5   :  { %v869_v33 = vpack.c.bf16 %v322_v32, %v321_v31  ;;  %v186_v7 = vmul.f32 %v1122_v59, %v167_v30 }
  0xc7   :  { %870 = vmatprep.subr.bf16.mxu0 %v869_v33  ;;  %v194_v14 = vadd.f32 %v186_v7, %v142_v11 }
  0xc8   :  { %872 = vmatpush3.bf16.msra.mxu0 %v869_v33 }
  0xc9   :  { %v74_v36 = vpop.permute.xlu1 %73 }
  0xca   :  { %v91_v10 = vmul.f32 %v1124_v60, %v74_v36 }
  0xce   :  { %v119_v42 = vpop.permute.xlu1 %118 }
  0xcf   :  { %v135_v15 = vmul.f32 %v1119_v56, %v119_v42 }
  0xd1   :  { %v143_v4 = vadd.f32 %v135_v15, %v91_v10 }
  0xd2   :  { %v123_v49 = vpop.permute.xlu1 %122 }
  0xd3   :  { %v136_v22 = vmul.f32 %v1119_v56, %v123_v49  ;;  %v333_v49 = vld [vmem:[%s1225_s3 + $0x20] sm:$0xff] }
  0xd5   :  { %v144_v29 = vadd.f32 %v136_v22, %v92_v21 }
  0xd7   :  { %v219_v58 = vpop.permute.xlu1 %218 }
  0xd8   :  { %v238_v12 = vmul.f32 %v1127_v63, %v219_v58 }
  0xda   :  { %v246_v16 = vadd.f32 %v238_v12, %v194_v14 }
  0xdc   :  { %v270_v44 = vpop.permute.xlu1 %269  ;;  %v302_v20 = vadd.f32 %v285_v19, %v246_v16 }
  0xdd   :  { %v299_v2 = vadd.f32 %v270_v44, %v243_v0 }
  0xde   :  { %v318_v26 = vmul.f32 0.01, %v302_v20  ;;  %vm310_vm5 = vcmp.ge.f32.partialorder %v302_v20, 0.0 }
  0xdf   :  { %vm307_vm4 = vcmp.ge.f32.partialorder %v299_v2, 0.0  ;;  %v315_v43 = vmul.f32 0.01, %v299_v2 }
  0xe0   :  { %v326_v35 = vsel %vm310_vm5, %v302_v20, %v318_v26 }
  0xe1   :  { %v171_v41 = vpop.permute.xlu1 %170  ;;  %v323_v5 = vsel %vm307_vm4, %v299_v2, %v315_v43 }
  0xe2   :  { %v873_v9 = vpack.c.bf16 %v324_v55, %v323_v5  ;;  %v187_v17 = vmul.f32 %v1122_v59, %v171_v41 }
  0xe4   :  { %874 = vmatprep.subr.bf16.mxu0 %v873_v9  ;;  %v195_v23 = vadd.f32 %v187_v17, %v143_v4 }
  0xe5   :  { %v175_v13 = vpop.permute.xlu1 %174  ;;  %876 = vmatpush3.bf16.msra.mxu0 %v873_v9  ;;  %v368_v9 = vpop.permute.xlu0 %367 }
  0xe6   :  { %v188_v27 = vmul.f32 %v1122_v59, %v175_v13  ;;  %v247_v32 = vadd.f32 %v239_v25, %v195_v23 }
  0xe8   :  { %v196_v33 = vadd.f32 %v188_v27, %v144_v29 }
  0xe9   :  { %v378_v23 = vpop.permute.xlu0 %377 }
  0xea   :  { %v227_v18 = vpop.permute.xlu1 %226 }
  0xeb   :  { %v240_v30 = vmul.f32 %v1127_v63, %v227_v18 }
  0xed   :  { %v248_v37 = vadd.f32 %v240_v30, %v196_v33 }
  0xef   :  { %v280_v24 = vpop.permute.xlu1 %279 }
  0xf0   :  { %v301_v28 = vadd.f32 %v280_v24, %v1134_v8 }
  0xf2   :  { %vm309_vm6 = vcmp.ge.f32.partialorder %v301_v28, 0.0  ;;  %v317_v31 = vmul.f32 0.01, %v301_v28 }
  0xf3   :  { %v290_v60 = vpop.permute.xlu1 %289 }
  0xf4   :  { %v303_v56 = vadd.f32 %v290_v60, %v247_v32  ;;  %v325_v34 = vsel %vm309_vm6, %v301_v28, %v317_v31  ;;  %vm683_vm6 = vcmask 261120  }
  0xf5   :  { %v877_v36 = vpack.c.bf16 %v326_v35, %v325_v34  ;;  %v541_v34 = vld [vmem:[%s1227_s5 + $0x10] sm:$0xff]  ;;  %v542_v35 = vld [vmem:[%s1227_s5 + $0x18] sm:$0xff] }
  0xf6   :  { %v319_v39 = vmul.f32 0.01, %v303_v56  ;;  %vm311_vm7 = vcmp.ge.f32.partialorder %v303_v56, 0.0 }
  0xf7   :  { %v295_v54 = vpop.permute.xlu1 %294  ;;  %878 = vmatprep.subr.bf16.mxu0 %v877_v36 }
  0xf8   :  { %v304_v59 = vadd.f32 %v295_v54, %v248_v37  ;;  %880 = vmatpush3.bf16.msra.mxu0 %v877_v36  ;;  %v327_v40 = vsel %vm311_vm7, %v303_v56, %v319_v39  ;;  %v540_v56 = vld [vmem:[%s1227_s5 + $0x8] sm:$0xff]  ;;  %v940_v36 = vmov 0.0|0.0   ;;  %v942_v37 = vmov 0.0   ;;  %v550_v39 = vpop.permute.xlu0 %549 }
  0xfa   :  { %vm312_vm8 = vcmp.ge.f32.partialorder %v304_v59, 0.0  ;;  %v320_v8 = vmul.f32 0.01, %v304_v59 }
  0xfb   :  { %v353_v53 = vpop.permute.xlu1 %352 }
  0xfc   :  { %v328_v63 = vsel %vm312_vm8, %v304_v59, %v320_v8 }
  0xfd   :  { %v881_v42 = vpack.c.bf16 %v328_v63, %v327_v40 }
  0xff   :  { %882 = vmatprep.subr.bf16.mxu0 %v881_v42  ;;  %v363_v38 = vpop.permute.xlu1 %362 }
 0x100   :  { %884 = vmatpush3.bf16.msra.mxu0 %v881_v42 }
 0x103   :  { %825 = vmatmul.mubr.msk.f32.vlgmr.msra.gmra.mrb[0].mxu0 %vm385_vm0, %v330_v45  ;;  %v373_v55 = vpop.permute.xlu1 %372 }
 0x104   :  { %827 = vmatprep.mubr.msk.f32.mxu0 %vm385_vm0, %v331_v47 }
 0x107   :  { %828 = vmatmul.mubr.msk.f32.gmra.mrb[2].mxu0 %vm385_vm0, %v332_v48  ;;  %v383_v20 = vpop.permute.xlu1 %382 }
 0x108   :  { %830 = vmatprep.mubr.msk.f32.mxu0 %vm385_vm0, %v333_v49  ;;  %v560_v49 = vpop.permute.xlu0 %559 }
 0x10b   :  { %831 = vmatmul.mubr.msk.f32.gmra.mrb[4].mxu0 %vm385_vm0, %v334_v50  ;;  %v555_v54 = vpop.permute.xlu1 %554 }
 0x10c   :  { %833 = vmatprep.mubr.msk.f32.mxu0 %vm385_vm0, %v335_v51 }
 0x10f   :  { %834 = vmatmul.mubr.msk.f32.gmra.mrb[6].mxu0 %vm385_vm0, %v336_v52  ;;  %v565_v45 = vpop.permute.xlu1 %564 }
 0x1d6   :  { %v826_v58 = vpop.f32.mrb[0].mxu0 }
 0x1d7   :  { %v482_v62 = vadd.f32 %v826_v58, %v353_v53  ;;  %v476_v0 = vpop.f32.mrb[1].mxu0 }
 0x1d8   :  { %v477_v44 = vadd.f32 %v476_v0, %v348_v57 }
 0x1d9   :  { %v524_v1 = vmul.f32 0.01, %v482_v62  ;;  %vm516_vm9 = vcmp.ge.f32.partialorder %v482_v62, 0.0 }
 0x1da   :  { %v523_v2 = vmul.f32 0.01, %v477_v44  ;;  %v829_v43 = vpop.f32.mrb[2].mxu0  ;;  %vm515_vm10 = vcmp.ge.f32.partialorder %v477_v44, 0.0 }
 0x1db   :  { %v492_v3 = vadd.f32 %v829_v43, %v363_v38  ;;  %v486_v41 = vpop.f32.mrb[3].mxu0  ;;  %v532_v5 = vsel %vm516_vm9, %v482_v62, %v524_v1  ;;  %v681_v1 = vpop.permute.xlu0 %680 }
 0x1dc   :  { %v487_v6 = vadd.f32 %v486_v41, %v358_v61  ;;  %v531_v7 = vsel %vm515_vm10, %v477_v44, %v523_v2  ;;  %v676_v44 = vld [vmem:[%s1228_s7] sm:$0x3] }
 0x1dd   :  { %vm518_vm11 = vcmp.ge.f32.partialorder %v492_v3, 0.0  ;;  %v526_v11 = vmul.f32 0.01, %v492_v3  ;;  %v885_v12 = vpack.c.bf16 %v532_v5, %v531_v7 }
 0x1de   :  { %vm517_vm12 = vcmp.ge.f32.partialorder %v487_v6, 0.0  ;;  %v525_v13 = vmul.f32 0.01, %v487_v6  ;;  %v832_v14 = vpop.f32.mrb[4].mxu0 }
 0x1df   :  { %v502_v15 = vadd.f32 %v832_v14, %v373_v55  ;;  %v496_v16 = vpop.f32.mrb[5].mxu0  ;;  %886 = vmatprep.subr.bf16.mxu1 %v885_v12  ;;  %v534_v10 = vsel %vm518_vm11, %v492_v3, %v526_v11 }
 0x1e0   :  { %v497_v17 = vadd.f32 %v496_v16, %v368_v9  ;;  %888 = vmatpush3.bf16.msra.mxu1 %v885_v12  ;;  %v533_v18 = vsel %vm517_vm12, %v487_v6, %v525_v13 }
 0x1e1   :  { %vm520_vm13 = vcmp.ge.f32.partialorder %v502_v15, 0.0  ;;  %v528_v19 = vmul.f32 0.01, %v502_v15  ;;  %v889_v4 = vpack.c.bf16 %v534_v10, %v533_v18 }
 0x1e2   :  { %vm519_vm14 = vcmp.ge.f32.partialorder %v497_v17, 0.0  ;;  %v527_v21 = vmul.f32 0.01, %v497_v17  ;;  %v835_v22 = vpop.f32.mrb[6].mxu0 }
 0x1e3   :  { %v512_v24 = vadd.f32 %v835_v22, %v383_v20  ;;  %v506_v25 = vpop.f32.mrb[7].mxu0  ;;  %890 = vmatprep.subr.bf16.mxu1 %v889_v4  ;;  %v536_v26 = vsel %vm520_vm13, %v502_v15, %v528_v19 }
 0x1e4   :  { %v507_v27 = vadd.f32 %v506_v25, %v378_v23  ;;  %892 = vmatpush3.bf16.msra.mxu1 %v889_v4  ;;  %v535_v28 = vsel %vm519_vm14, %v497_v17, %v527_v21 }
 0x1e5   :  { %vm522_vm15 = vcmp.ge.f32.partialorder %v512_v24, 0.0  ;;  %v530_v29 = vmul.f32 0.01, %v512_v24  ;;  %v893_v30 = vpack.c.bf16 %v536_v26, %v535_v28 }
 0x1e6   :  { %vm521_vm1 = vcmp.ge.f32.partialorder %v507_v27, 0.0  ;;  %v529_v31 = vmul.f32 0.01, %v507_v27 }
 0x1e7   :  { %894 = vmatprep.subr.bf16.mxu1 %v893_v30  ;;  %v538_v32 = vsel %vm522_vm15, %v512_v24, %v530_v29 }
 0x1e8   :  { %896 = vmatpush3.bf16.msra.mxu1 %v893_v30  ;;  %v537_v60 = vsel %vm521_vm1, %v507_v27, %v529_v31 }
 0x1e9   :  { %v897_v33 = vpack.c.bf16 %v538_v32, %v537_v60 }
 0x1eb   :  { %898 = vmatprep.subr.bf16.mxu1 %v897_v33 }
 0x1ec   :  { %900 = vmatpush3.bf16.msra.mxu1 %v897_v33 }
 0x1ed   :  { %901 = vmatprep.subr.bf16.mxu1 %v940_v36 }
 0x1ef   :  { %853 = vmatmul.mubr.msk.f32.vlgmr.msra.gmra.mrb[0].mxu1 %vm385_vm0, %v540_v56 }
 0x1f0   :  { %855 = vmatprep.mubr.msk.f32.mxu1 %vm385_vm0, %v541_v34 }
 0x1f3   :  { %856 = vmatmul.mubr.msk.f32.gmra.mrb[2].mxu1 %vm385_vm0, %v542_v35 }
 0x1f4   :  { %866 = vmatprep.mubr.msk.f32.mxu1 %vm941_vm2, %v942_v37 }
 0x2c2   :  { %v854_v59 = vpop.f32.mrb[0].mxu1 }
 0x2c3   :  { %v651_v8 = vadd.f32 %v854_v59, %v555_v54  ;;  %v645_v40 = vpop.f32.mrb[1].mxu1 }
 0x2c4   :  { %v646_v63 = vadd.f32 %v645_v40, %v550_v39 }
 0x2c5   :  { %vm665_vm3 = vcmp.ge.f32.partialorder %v651_v8, 0.0  ;;  %v669_v42 = vmul.f32 0.01, %v651_v8 }
 0x2c6   :  { %vm664_vm4 = vcmp.ge.f32.partialorder %v646_v63, 0.0  ;;  %v668_v47 = vmul.f32 0.01, %v646_v63  ;;  %v857_v48 = vpop.f32.mrb[2].mxu1 }
 0x2c7   :  { %v673_v50 = vsel %vm665_vm3, %v651_v8, %v669_v42  ;;  %v661_v51 = vadd.f32 %v857_v48, %v565_v45  ;;  %v655_v52 = vpop.f32.mrb[3].mxu1 }
 0x2c8   :  { %v672_v46 = vsel %vm664_vm4, %v646_v63, %v668_v47  ;;  %v656_v53 = vadd.f32 %v655_v52, %v560_v49 }
 0x2c9   :  { %v902_v57 = vpack.c.bf16 %v673_v50, %v672_v46  ;;  %vm667_vm0 = vcmp.ge.f32.partialorder %v661_v51, 0.0  ;;  %v671_v38 = vmul.f32 0.01, %v661_v51 }
 0x2ca   :  { %vm666_vm5 = vcmp.ge.f32.partialorder %v656_v53, 0.0  ;;  %v670_v58 = vmul.f32 0.01, %v656_v53 }
 0x2cb   :  { %v675_v61 = vsel %vm667_vm0, %v661_v51, %v671_v38  ;;  %903 = vmatpush3.bf16.msra.mxu1 %v902_v57 }
 0x2cc   :  { %v674_v62 = vsel %vm666_vm5, %v656_v53, %v670_v58  ;;  %904 = vmatprep.subr.bf16.mxu1 %v940_v36 }
 0x2cd   :  { %v905_v0 = vpack.c.bf16 %v675_v61, %v674_v62 }
 0x2cf   :  { %906 = vmatpush3.bf16.msra.mxu1 %v905_v0 }
 0x2d2   :  { %867 = vmatmul.mubr.msk.f32.vlgmr.msra.gmra.mrb[4].mxu1 %vm683_vm6, %v676_v44 }
 0x3a5   :  { %v753_v2 = vpop.f32.mrb[4].mxu1 }
 0x3a6   :  { %v754_v43 = vadd.f32 %v753_v2, %v681_v1  ;;  %v868_v3 = vpop.f32.mrb[5].mxu1 }
 0x3a8   :  { %757 = vst [vmem:[%s1229_s9] sm:$0x3] %v754_v43 }

</bundles_post_ra>
